<compile_context>
chip_gen: v5e
topology: v5e:2x2
jax: 0.10.0
libtpu: 0.0.40
codegen_flags: <defaults>
</compile_context>

<pallas_src>
import jax
import jax.numpy as jnp
from jax.experimental import pallas as pl
from jax.experimental.pallas import tpu as pltpu

_LANE = 128
_SUBLANE = 8


def _round_up(x: int, m: int) -> int:
    return ((x + m - 1) // m) * m


def _kl_partial_kernel(mu_ref, logsig_ref, o_ref):
    # o_ref is this core's (8, 128) partial-sum slab, resident across the
    # sequential ("arbitrary") grid axis.  Zero it on the first step.
    @pl.when(pl.program_id(1) == 0)
    def _():
        o_ref[...] = jnp.zeros_like(o_ref)

    mu = mu_ref[...].astype(jnp.float32)
    ls = logsig_ref[...].astype(jnp.float32)
    # elementwise: 1 + logsig - mu^2 - exp(logsig)   (exp goes to the EUP slot)
    val = 1.0 + ls - mu * mu - jnp.exp(ls)                 # (tb, 128)
    # Fold (tb, 128) down to one (8, 128) vreg: reduction over the leading,
    # non-tiled axis lowers to elementwise vreg adds (VPU only, hides under DMA).
    o_ref[...] += val.reshape(-1, _SUBLANE, _LANE).sum(axis=0)


def kl_divergence(mu: jax.Array, logsig: jax.Array, *,
                  block_rows: int = 4096, cores: int = 2) -> jax.Array:
    """Pallas TPU implementation of -0.5 * sum(1 + logsig - mu^2 - exp(logsig))."""
    assert mu.shape == logsig.shape
    n = mu.size

    # ---- lane-dense layout: flatten, pad with zeros, view as (rows, 128) ----
    rows = max(-(-n // _LANE), _SUBLANE)                   # cdiv, >= 1 sublane tile
    tb = min(_round_up(block_rows, _SUBLANE), _round_up(rows, _SUBLANE))
    rows_padded = _round_up(rows, tb * cores)
    n_padded = rows_padded * _LANE
    grid_n = rows_padded // (tb * cores)                   # blocks per core

    def _prep(x):
        flat = x.reshape(-1)
        if n_padded != n:
            flat = jnp.pad(flat, (0, n_padded - n))        # zeros -> contribute 0
        return flat.reshape(rows_padded, _LANE)

    mu2d = _prep(mu)
    ls2d = _prep(logsig)

    partials = pl.pallas_call(
        _kl_partial_kernel,
        out_shape=jax.ShapeDtypeStruct((cores * _SUBLANE, _LANE), jnp.float32),
        grid_spec=pltpu.PrefetchScalarGridSpec(
            num_scalar_prefetch=0,
            grid=(cores, grid_n),
            in_specs=[
                pl.BlockSpec((tb, _LANE), lambda c, i: (c * grid_n + i, 0)),
                pl.BlockSpec((tb, _LANE), lambda c, i: (c * grid_n + i, 0)),
            ],
            # Each core owns its own (8, 128) output block, resident across the
            # sequential axis -> race-free per-core accumulation.
            out_specs=pl.BlockSpec((_SUBLANE, _LANE), lambda c, i: (c, 0)),
        ),
        compiler_params=pltpu.CompilerParams(
            dimension_semantics=("parallel", "arbitrary"),
        ),
    )(mu2d, ls2d)

    # Tiny final reduction (cores * 1024 floats) done once, outside the loop.
    return -0.5 * jnp.sum(partials)


def kl_divergence_ref(mu, logsig):
    return -0.5 * jnp.sum(1.0 + logsig - mu ** 2 - jnp.exp(logsig))


if __name__ == "__main__":
    key = jax.random.PRNGKey(0)
    k1, k2, k3, k4 = jax.random.split(key, 4)

    # Small shape matching the module default (latent_dim=2).
    mu = jax.random.normal(k1, (16, 2), dtype=jnp.float32)
    logsig = 0.1 * jax.random.normal(k2, (16, 2), dtype=jnp.float32)
    out = jax.block_until_ready(kl_divergence(mu, logsig))
    ref = kl_divergence_ref(mu, logsig)
    assert jnp.allclose(out, ref, rtol=1e-5, atol=1e-5), (out, ref)

    # Ragged shape + small block_rows to exercise padding and the multi-step
    # accumulation path (grid_n > 1).
    mu2 = jax.random.normal(k3, (64, 33), dtype=jnp.float32)
    ls2 = 0.1 * jax.random.normal(k4, (64, 33), dtype=jnp.float32)
    out2 = jax.block_until_ready(kl_divergence(mu2, ls2, block_rows=8))
    ref2 = kl_divergence_ref(mu2, ls2)
    assert jnp.allclose(out2, ref2, rtol=1e-5, atol=1e-3), (out2, ref2)

    print("KERNEL_OK")
</pallas_src>

<mosaic_0001>
module attributes {stable_mosaic.version = 11 : i64} {
  func.func @_kl_partial_kernel(%arg0: i32, %arg1: i32, %arg2: memref<8x128xf32, #tpu.memory_space<vmem>>, %arg3: memref<8x128xf32, #tpu.memory_space<vmem>>, %arg4: memref<8x128xf32, #tpu.memory_space<vmem>>) attributes {dimension_semantics = [#tpu.dimension_semantics<parallel>, #tpu.dimension_semantics<arbitrary>], iteration_bounds = array<i64: 2, 1>, scalar_prefetch = 0 : i64, scratch_operands = 0 : i64, tpu.core_type = #tpu.core_type<tc>, window_params = [{transform_indices = @transform_0, window_bounds = array<i64: 8, 128>}, {transform_indices = @transform_1, window_bounds = array<i64: 8, 128>}, {transform_indices = @transform_2, window_bounds = array<i64: 8, 128>}]} {
    %c0_i32 = arith.constant 0 : i32
    %0 = arith.cmpi eq, %arg1, %c0_i32 : i32
    %1 = arith.extui %0 : i1 to i32
    %c0_i32_0 = arith.constant 0 : i32
    %2 = arith.cmpi ne, %1, %c0_i32_0 : i32
    scf.if %2 {
      %cst_9 = arith.constant 0.000000e+00 : f32
      %16 = vector.broadcast %cst_9 : f32 to vector<8x128xf32>
      %c0_10 = arith.constant 0 : index
      %c0_11 = arith.constant 0 : index
      %17 = vector.load %arg4[%c0_10, %c0_11] : memref<8x128xf32, #tpu.memory_space<vmem>>, vector<8x128xf32>
      tpu.vector_store %arg4[%c0_10, %c0_11], %16 {strides = array<i32>} : memref<8x128xf32, #tpu.memory_space<vmem>>, vector<8x128xf32>,
    } else {
    }
    %c0 = arith.constant 0 : index
    %c0_1 = arith.constant 0 : index
    %3 = vector.load %arg2[%c0, %c0_1] : memref<8x128xf32, #tpu.memory_space<vmem>>, vector<8x128xf32>
    %c0_2 = arith.constant 0 : index
    %c0_3 = arith.constant 0 : index
    %4 = vector.load %arg3[%c0_2, %c0_3] : memref<8x128xf32, #tpu.memory_space<vmem>>, vector<8x128xf32>
    %cst = arith.constant 1.000000e+00 : f32
    %5 = vector.broadcast %cst : f32 to vector<8x128xf32>
    %6 = arith.addf %5, %4 : vector<8x128xf32>
    %7 = arith.mulf %3, %3 : vector<8x128xf32>
    %8 = arith.subf %6, %7 : vector<8x128xf32>
    %9 = math.exp %4 : vector<8x128xf32>
    %10 = arith.subf %8, %9 : vector<8x128xf32>
    %c0_4 = arith.constant 0 : index
    %c0_5 = arith.constant 0 : index
    %11 = vector.load %arg4[%c0_4, %c0_5] : memref<8x128xf32, #tpu.memory_space<vmem>>, vector<8x128xf32>
    %12 = vector.shape_cast %10 : vector<8x128xf32> to vector<1x8x128xf32>
    %cst_6 = arith.constant dense<0.000000e+00> : vector<8x128xf32>
    %13 = vector.multi_reduction <add>, %12, %cst_6 [0] : vector<1x8x128xf32> to vector<8x128xf32>
    %14 = arith.addf %11, %13 : vector<8x128xf32>
    %c0_7 = arith.constant 0 : index
    %c0_8 = arith.constant 0 : index
    %15 = vector.load %arg4[%c0_7, %c0_8] : memref<8x128xf32, #tpu.memory_space<vmem>>, vector<8x128xf32>
    tpu.vector_store %arg4[%c0_7, %c0_8], %14 {strides = array<i32>} : memref<8x128xf32, #tpu.memory_space<vmem>>, vector<8x128xf32>,
    return
  }
  func.func @transform_0(%arg0: i32, %arg1: i32) -> (i32, i32) {
    %c1_i32 = arith.constant 1 : i32
    %0 = arith.muli %arg0, %c1_i32 : i32
    %1 = arith.addi %0, %arg1 : i32
    %c0_i32 = arith.constant 0 : i32
    %c0_i32_0 = arith.constant 0 : i32
    return %1, %c0_i32 : i32, i32
  }
  func.func @transform_1(%arg0: i32, %arg1: i32) -> (i32, i32) {
    %c1_i32 = arith.constant 1 : i32
    %0 = arith.muli %arg0, %c1_i32 : i32
    %1 = arith.addi %0, %arg1 : i32
    %c0_i32 = arith.constant 0 : i32
    %c0_i32_0 = arith.constant 0 : i32
    return %1, %c0_i32 : i32, i32
  }
  func.func @transform_2(%arg0: i32, %arg1: i32) -> (i32, i32) {
    %c0_i32 = arith.constant 0 : i32
    %c0_i32_0 = arith.constant 0 : i32
    return %arg0, %c0_i32 : i32, i32
  }
}

</mosaic_0001>

<bundles_post_ra>
// kernel: tpu_custom_call.1
= control target key start
LH: loop header
LB: loop body
LE: loop exit
PB: predicated region body
PF: predicated region fallthrough
CT: control target
= control target key end

     0   :  { %7 = vsyncpa [#allocation3], 0  ;;  %s733_s0 = inlined_call_operand.hbm [shape: f32[16,128], index: 0, kind: input, shape index: {}]   ;;  %s734_s1 = inlined_call_operand.hbm [shape: f32[16,128], index: 1, kind: input, shape index: {}]   ;;  %s735_s2 = inlined_call_operand.hbm [shape: f32[16,128], index: 2, kind: output, shape index: {}]  }
   0x1   :  { %9 = vsyncpa [#allocation3 + $0x1], 0 }
   0x2   :  { %10 = vsyncpa [#allocation6], 0 }
   0x3   :  { %12 = vsyncpa [#allocation6 + $0x1], 0 }
   0x4   :  { %13 = vsyncpa [#allocation4], 0 }
   0x5   :  { %15 = vsyncpa [#allocation4 + $0x1], 0  ;;  %s605_s9 = smov 0   ;;  %s607_s10 = smov 0  }
   0x6   :  { %s609_s11 = smov 0   ;;  %s611_s12 = smov 0  }
   0x7   :  { %s613_s13 = smov 0   ;;  %s615_s14 = smov 0  }
   0x8 LB: > { %s356_s15 = sadd.s32 4294967295, %s588_s14   ;;  %s357_s16 = sadd.s32 4294967294, %s588_s14   ;;  %s588_s14 = sphi %s615_s14, %s21_s14   ;;  %s584_s13 = sphi %s613_s13, %s744_s13   ;;  %s580_s12 = sphi %s611_s12, %s743_s12   ;;  %s576_s11 = sphi %s609_s11, %s742_s11   ;;  %s572_s10 = sphi %s607_s10, %s741_s10   ;;  %s568_s9 = sphi %s605_s9, %s740_s9  }
   0x9   : > { %s33_s17 = sadd.s32 1, %s584_s13  ;;  %s42_s18 = sadd.s32 1, %s576_s11 }
   0xa   : > { %p35_p0 = scmp.ge.s32.totalorder %s33_s17, 2  ;;  %p49_p1 = scmp.ne.s32.totalorder %s576_s11, %s572_s10 }
   0xb   : > { %p50_p2 = scmp.eq.s32.totalorder %s588_s14, 0  ;;  %p55_p3 = scmp.ne.s32.totalorder %s572_s10, %s568_s9 }
   0xc   : > { %s746_s17 = smov (%p35_p0, %s33_s17), 0  ;;  %p56_p5 = scmp.eq.s32.totalorder %s356_s15, 0 }
   0xd   : > { %p646_p4 = por %p50_p2, %p49_p1  ;;  %s39_s20 = ssub.s32 %s584_s13, %s746_s17 }
   0xe   : > { %p107_p6 = scmp.eq.s32.totalorder %s356_s15, 1  ;;  %p40_p7 = scmp.eq.s32.totalorder %s39_s20, 0 }
   0xf   : > { %p652_p8 = por %p56_p5, %p55_p3  ;;  %p113_p10 = scmp.eq.s32.totalorder %s357_s16, 1 }
  0x10   : > { %p656_p9 = por %p107_p6, %p49_p1  ;;  %p359_p12 = scmp.ge.s32.totalorder %s588_s14, 2 }
  0x11   : > { %s661_s23 = scalar_select %p40_p7, %s576_s11, %s42_s18  }
  0x12   : > { %p663_p11 = por %p113_p10, %p55_p3  ;;  %p389_p13 = scmp.lt.s32.totalorder %s588_s14, 2 }
  0x13   : > { %s133_s25 = sand.u32 1, %s576_s11   ;;  %s361_s27 = sshll.u32 %s584_s13, 3 }
  0x14   : > { %s360_s26 = sshll.u32 %s133_s25, 3  ;;  %s142_s30 = scalar_lea.hbm %s733_s0, %s361_s27 }
  0x15   : > { %s137_s3 = scalar_lea.vmem [#allocation2], %s360_s26  ;;  %s144_s5 = sshll.u32 %s142_s30, 4  ;;  %s145_s5 = int_to_ptr.hbm [resolvable:$true] %s144_s5 }
  0x16   : > { %s146_s4 = sshll.u32 %s137_s3, 4  ;;  %p379_p0 = pnand %p389_p13, %p646_p4  ;;  %s147_s4 = int_to_ptr.vmem [resolvable:$true] %s146_s4 }
  0x17   : > { %p364_p1 = scmp.ge.s32.totalorder %s588_s14, 1  ;;  %p171_p2 = scmp.lt.s32.totalorder %s588_s14, 3 }
  0x18   : > { %s134_s6 = scalar_lea.sflag [#allocation3], %s133_s25  ;;  %s162_s15 = scalar_lea.hbm %s734_s1, %s361_s27 }
  0x19   : > { %381 = dma.hbm_to_vmem [thread:$0]  (!%p379_p0), %s145_s5, 128, %s147_s4, %s134_s6  }
  0x1a   : > { %p172_p3 = pnand %p364_p1, %p171_p2  ;;  %s157_s16 = scalar_lea.vmem [#allocation5], %s360_s26 }
  0x1b   : > { %s166_s18 = sshll.u32 %s157_s16, 4  ;;  %s164_s20 = sshll.u32 %s162_s15, 4  ;;  %s167_s18 = int_to_ptr.vmem [resolvable:$true] %s166_s18  ;;  %s165_s20 = int_to_ptr.hbm [resolvable:$true] %s164_s20 }
  0x1c   : > { %s154_s28 = scalar_lea.sflag [#allocation6], %s133_s25  ;;  %175 = sbr.rel (%p172_p3) target bundleno = 51 (0x33), region = 28 }
  0x1d   : > { %384 = dma.hbm_to_vmem [thread:$0]  (!%p379_p0), %s165_s20, 128, %s167_s18, %s154_s28  }
  0x1e   : > { %s682_s19 = sand.u32 (!%p172_p3), 1, %s572_s10  }
  0x1f   : > { %s365_s29 = sshll.u32 (!%p172_p3), %s682_s19, 3  ;;  %s178_s30 = scalar_lea.sflag (!%p172_p3), [#allocation3], %s682_s19 }
  0x20   : > { %s181_s3 = scalar_lea.vmem (!%p172_p3), [#allocation2], %s365_s29 }
  0x21   : > { %555 = dma.done.wait (%p652_p8), %s178_s30, 128  }
  0x22   : > { %557 = vsyncadd (%p652_p8), %s178_s30, 4294967168  ;;  %s188_s26 = scalar_lea.sflag [#allocation6], %s682_s19  ;;  %s191_s25 = scalar_lea.vmem [#allocation5], %s365_s29 }
  0x23   : > { %559 = dma.done.wait (%p652_p8), %s188_s26, 128  }
  0x24   : > { %561 = vsyncadd (%p652_p8), %s188_s26, 4294967168  ;;  %v225_v0 = vld [vmem:[%s181_s3] sm:$0xff]  ;;  %v226_v1 = vld [vmem:[%s191_s25] sm:$0xff]  ;;  %s369_s27 = sshll.u32 %s580_s12, 3  ;;  %s217_s7 = scalar_lea.vmem [#allocation7], %s365_s29 }
  0x25   : > { %v230_v2 = vmul.f32 1.442695, %v226_v1  ;;  %v227_v3 = vadd.f32 1.0, %v226_v1  ;;  %v228_v4 = vmul.f32 %v225_v0, %v225_v0  ;;  %s248_s6 = scalar_lea.hbm %s735_s2, %s369_s27  ;;  %s250_s8 = sshll.u32 %s217_s7, 4  ;;  %s251_s8 = int_to_ptr.vmem [resolvable:$true] %s250_s8 }
  0x26   : > { %s252_s21 = sshll.u32 %s248_s6, 4  ;;  %s238_s15 = scalar_lea.sflag [#allocation4], %s682_s19  ;;  %s253_s21 = int_to_ptr.hbm [resolvable:$true] %s252_s21 }
  0x27   : > { %440 = vpow2.f32 %v230_v2  ;;  %v229_v5 = vsub.f32 %v227_v3, %v228_v4  ;;  %s516_s16 = sshra.s32 %s253_s21, 4  ;;  %s522_s28 = scalar_lea.hbm %s735_s2, 16  ;;  %s517_s16 = int_to_ptr.hbm [resolvable:$true] %s516_s16 }
  0x28   : > { %s518_s18 = scalar_lea.hbm %s517_s16, 8  ;;  %p523_p7 = scmp.lt.s32.totalorder %s517_s16, %s735_s2 }
  0x29   : > { %p519_p4 = scmp.ne.s32.totalorder %s517_s16, %s518_s18  ;;  %p524_p8 = scmp.lt.s32.totalorder %s522_s28, %s518_s18 }
  0x2b   : > { %p520_p5 = pnand %p519_p4, %p656_p9  ;;  %p525_p10 = por %p524_p8, %p523_p7 }
  0x2d   : > { %v441_v6 = vpop.eup %440  ;;  %p521_p6 = pneg %p520_p5 }
  0x2e   : > { %v232_v7 = vsub.f32 %v229_v5, %v441_v6 }
  0x2f   : > { %p526_p13 = pnand %p525_p10, %p521_p6 }
  0x30   : > { %236 = vst [vmem:[%s217_s7] sm:$0xff] %v232_v7 }
  0x31   : > { %529 = shalt.err (!%p526_p13)
}
  0x32   : > { %376 = dma.vmem_to_hbm [thread:$0]  (%p656_p9), %s251_s8, 128, %s253_s21, %s238_s15  }
  0x33 PF: > { %s264_s19 = sand.u32 1, %s568_s9   ;;  %p386_p0 = pnand %p359_p12, %p663_p11 }
  0x34   : > { %s265_s3 = scalar_lea.sflag [#allocation4], %s264_s19 }
  0x35   : > { %p387_p1 = pneg %p386_p0 }
  0x37   : > { %563 = dma.done.wait (%p387_p1), %s265_s3, 128  }
  0x38   : > { %565 = vsyncadd (%p387_p1), %s265_s3, 4294967168  ;;  %s21_s14 = sadd.s32 1, %s588_s14   ;;  %s740_s9 = smov %s572_s10 }
  0x39   : > { %p18_p2 = scmp.ge.s32.totalorder %s21_s14, 4   ;;  %s741_s10 = smov %s576_s11 }
  0x3a   : > { %s742_s11 = smov %s661_s23  ;;  %s743_s12 = smov %s584_s13 }
  0x3b   : > { %s744_s13 = smov %s746_s17  ;;  %20 = sbr.rel (!%p18_p2) target bundleno = 8 (0x8), region = 90 }
  0x40   :  { %271 = vsyncpa [#allocation3], 1 }
  0x41   :  { %273 = vsyncpa [#allocation3 + $0x1], 1 }
  0x42   :  { %274 = vsyncpa [#allocation6], 1 }
  0x43   :  { %276 = vsyncpa [#allocation6 + $0x1], 1 }
  0x44   :  { %277 = vsyncpa [#allocation4], 1 }
  0x45   :  { %279 = vsyncpa [#allocation4 + $0x1], 1 }

</bundles_post_ra>
